<compile_context>
chip_gen: v7x
topology: tpu7x:2x2x1
jax: 0.10.0
libtpu: 0.0.40
codegen_flags: <defaults>
</compile_context>

<pallas_src>
import functools

import jax
import jax.numpy as jnp
from jax import lax
from jax.experimental import pallas as pl
from jax.experimental.pallas import tpu as pltpu


def _round_up(v: int, m: int) -> int:
    return (v + m - 1) // m * m


def _pick_tile(total: int, unit: int, target: int) -> int:
    """Largest multiple of `unit` that divides `total` and is <= target (>= unit)."""
    k_max = max(1, min(total, target) // unit)
    for k in range(k_max, 0, -1):
        cand = k * unit
        if total % cand == 0:
            return cand
    return unit


def _vmem_limit_bytes() -> int:
    cap = 64 * 1024 * 1024  # conservative default (v7x physical VMEM)
    try:
        info = pltpu.get_tpu_info()
        cap = int(getattr(info, "vmem_capacity_bytes", cap))
    except Exception:
        pass
    return min(cap * 3 // 4, 96 * 1024 * 1024)


# ---------------------------------------------------------------------------
# Pass 1: B/N/K-tiled Linear (bf16 MXU operands, f32 accumulation) + per-tile
#         partial batch statistics (sum, sum of squares) written at the last K step.
# ---------------------------------------------------------------------------
def _linear_stats_kernel(x_ref,        # (tb, tk)   bf16
                         w_ref,        # (tk, tn)   bf16
                         h_ref,        # (tb, tn)   f32   out: pre-BN activations
                         stats_ref,    # (8, tn)    f32   out: row0=sum, row1=sumsq
                         acc_ref):     # (tb, tn)   f32   VMEM accumulator scratch
    k = pl.program_id(2)
    nk = pl.num_programs(2)

    @pl.when(k == 0)
    def _():
        acc_ref[...] = jnp.zeros_like(acc_ref)

    acc_ref[...] += jnp.dot(x_ref[...], w_ref[...],
                            preferred_element_type=jnp.float32)

    @pl.when(k == nk - 1)
    def _():
        h = acc_ref[...]
        h_ref[...] = h.astype(h_ref.dtype)
        # Padded batch rows are exactly zero (zero x rows, no bias), so they add
        # nothing to the statistics; the true-batch divisor is applied in the wrapper.
        s = jnp.sum(h, axis=0, keepdims=True)          # (1, tn)
        ss = jnp.sum(h * h, axis=0, keepdims=True)     # (1, tn)
        pad = jnp.zeros((stats_ref.shape[0] - 2, stats_ref.shape[1]), jnp.float32)
        stats_ref[...] = jnp.concatenate([s, ss, pad], axis=0)


# ---------------------------------------------------------------------------
# Pass 2: streaming BatchNorm affine (scale/shift precomputed in the wrapper) + SiLU
# ---------------------------------------------------------------------------
def _bn_silu_kernel(h_ref,       # (tb2, tn2) f32
                    scale_ref,   # (1,   tn2) f32
                    shift_ref,   # (1,   tn2) f32
                    o_ref):      # (tb2, tn2) f32
    y = h_ref[...] * scale_ref[...] + shift_ref[...]
    o_ref[...] = y * jax.nn.sigmoid(y)    # SiLU


# ---------------------------------------------------------------------------
# Parameter preparation (padding / casting done once, outside the hot path).
# ---------------------------------------------------------------------------
def prepare_params(params, mxu_dtype=jnp.bfloat16):
    w = jnp.asarray(params["w"], jnp.float32)            # (Fin, Fout), torch weight.T
    gamma = jnp.asarray(params["gamma"], jnp.float32).reshape(-1)
    beta = jnp.asarray(params["beta"], jnp.float32).reshape(-1)
    fin, fout = w.shape
    fin_p, fout_p = _round_up(fin, 128), _round_up(fout, 128)
    w_p = jnp.zeros((fin_p, fout_p), mxu_dtype).at[:fin, :fout].set(w.astype(mxu_dtype))
    g_p = jnp.zeros((fout_p,), jnp.float32).at[:fout].set(gamma)
    b_p = jnp.zeros((fout_p,), jnp.float32).at[:fout].set(beta)
    # The Linear bias is intentionally omitted: BatchNorm subtracts the batch mean, so a
    # per-feature constant bias cancels exactly and has no effect on the forward output.
    return dict(w=w_p, gamma=g_p, beta=b_p, in_features=fin, out_features=fout)


# ---------------------------------------------------------------------------
# Forward pass wrapper.
# ---------------------------------------------------------------------------
def mlp_layer(x, w_p, gamma_p, beta_p, *, in_features, out_features,
              eps=1e-5, mxu_dtype=jnp.bfloat16):
    B, fin = x.shape
    assert fin == in_features
    fin_p, fout_p = w_p.shape
    f32 = jnp.float32

    # ---- tiling ------------------------------------------------------------
    tb = min(256, _round_up(B, 8))            # batch tile (multiple of 8 sublanes)
    b_p = _round_up(B, tb)
    tk = _pick_tile(fin_p, 128, 512)          # reduction tile
    tn = _pick_tile(fout_p, 128, 512)         # output-feature tile
    nb, nn, nk = b_p // tb, fout_p // tn, fin_p // tk

    # Pad x only if needed (weights/gamma/beta were padded once in prepare_params).
    x = x.astype(mxu_dtype)
    if (b_p, fin_p) != (B, fin):
        x = jnp.zeros((b_p, fin_p), mxu_dtype).at[:B, :fin].set(x)

    vmem_cap = _vmem_limit_bytes()

    # ---- pass 1: tiled Linear + per-tile partial statistics -----------------
    h, stats = pl.pallas_call(
        _linear_stats_kernel,
        out_shape=(jax.ShapeDtypeStruct((b_p, fout_p), f32),
                   jax.ShapeDtypeStruct((8 * nb, fout_p), f32)),
        grid_spec=pltpu.PrefetchScalarGridSpec(
            num_scalar_prefetch=0,
            grid=(nb, nn, nk),
            in_specs=[pl.BlockSpec((tb, tk), lambda i, j, k: (i, k)),
                      pl.BlockSpec((tk, tn), lambda i, j, k: (k, j))],
            out_specs=[pl.BlockSpec((tb, tn), lambda i, j, k: (i, j)),
                       pl.BlockSpec((8, tn), lambda i, j, k: (i, j))],
            scratch_shapes=[pltpu.VMEM((tb, tn), f32)],
        ),
        compiler_params=pltpu.CompilerParams(
            dimension_semantics=("parallel", "parallel", "arbitrary"),
            vmem_limit_bytes=vmem_cap,
        ),
    )(x, w_p)

    # ---- tiny cross-tile reduction + BN scale/shift precompute (wrapper side) ----
    stats = stats.reshape(nb, 8, fout_p)
    s = jnp.sum(stats[:, 0, :], axis=0)
    ss = jnp.sum(stats[:, 1, :], axis=0)
    inv_n = 1.0 / float(B)                               # true batch size (static)
    mean = s * inv_n
    var = jnp.maximum(ss * inv_n - mean * mean, 0.0)     # biased (training-mode) variance
    scale = (gamma_p * lax.rsqrt(var + eps)).reshape(1, fout_p)
    shift = (beta_p - mean * gamma_p * lax.rsqrt(var + eps)).reshape(1, fout_p)

    # ---- pass 2: streaming BN affine + SiLU ---------------------------------
    tb2 = _pick_tile(b_p, 8, 512)
    tn2 = _pick_tile(fout_p, 128, 1024)
    out_p = pl.pallas_call(
        _bn_silu_kernel,
        out_shape=jax.ShapeDtypeStruct((b_p, fout_p), f32),
        grid_spec=pltpu.PrefetchScalarGridSpec(
            num_scalar_prefetch=0,
            grid=(b_p // tb2, fout_p // tn2),
            in_specs=[pl.BlockSpec((tb2, tn2), lambda i, j: (i, j)),
                      pl.BlockSpec((1, tn2), lambda i, j: (0, j)),
                      pl.BlockSpec((1, tn2), lambda i, j: (0, j))],
            out_specs=pl.BlockSpec((tb2, tn2), lambda i, j: (i, j)),
        ),
        compiler_params=pltpu.CompilerParams(
            dimension_semantics=("parallel", "parallel"),
            vmem_limit_bytes=vmem_cap,
        ),
    )(h, scale, shift)

    if (b_p, fout_p) == (B, out_features):
        return out_p
    return out_p[:B, :out_features]


# ---------------------------------------------------------------------------
# References & init.
# ---------------------------------------------------------------------------
def mlp_layer_ref(x, params, *, matmul_dtype=jnp.float32, use_bias=True, eps=1e-5):
    """Pure-JAX reference (training-mode BatchNorm).  matmul_dtype=bfloat16 emulates the
    kernel's MXU operand precision; use_bias=False matches the kernel's bias-free path
    (the bias is cancelled exactly by BatchNorm)."""
    h = jnp.dot(x.astype(matmul_dtype).astype(jnp.float32),
                params["w"].astype(matmul_dtype).astype(jnp.float32))
    if use_bias:
        h = h + params["b"]
    mu = jnp.mean(h, axis=0, keepdims=True)
    var = jnp.mean((h - mu) ** 2, axis=0, keepdims=True)
    y = (h - mu) * lax.rsqrt(var + eps) * params["gamma"] + params["beta"]
    return y * jax.nn.sigmoid(y)


def init_mlp_params(key, in_features, out_features):
    # nn.Linear default init: uniform(-1/sqrt(in), 1/sqrt(in)); BN gamma=1, beta=0.
    kw, kb = jax.random.split(key)
    s = 1.0 / float(in_features) ** 0.5
    return dict(
        w=jax.random.uniform(kw, (in_features, out_features), jnp.float32, -s, s),
        b=jax.random.uniform(kb, (1, out_features), jnp.float32, -s, s),
        gamma=jnp.ones((1, out_features), jnp.float32),
        beta=jnp.zeros((1, out_features), jnp.float32),
    )


if __name__ == "__main__":
    key = jax.random.PRNGKey(0)
    B, FIN, FOUT = 32, 16, 32
    kx, kp = jax.random.split(key)

    x = jax.random.normal(kx, (B, FIN), jnp.float32)
    params = init_mlp_params(kp, FIN, FOUT)

    kparams = prepare_params(params)   # pad / cast once, outside the hot path
    fwd = jax.jit(functools.partial(mlp_layer, in_features=FIN, out_features=FOUT))
    out = fwd(x, kparams["w"], kparams["gamma"], kparams["beta"])
    jax.block_until_ready(out)
    assert out.shape == (B, FOUT)

    # Tight check: reference that follows the kernel's numeric path
    # (bf16 MXU operands, f32 accumulation, bias dropped — BN cancels it exactly).
    ref_bf16 = mlp_layer_ref(x, params, matmul_dtype=jnp.bfloat16, use_bias=False)
    err_tight = float(jnp.max(jnp.abs(out - ref_bf16)))
    # Loose check: exact f32 PyTorch-semantics reference (bias included); the gap is
    # purely bf16 rounding of the MXU operands.
    ref_f32 = mlp_layer_ref(x, params, matmul_dtype=jnp.float32, use_bias=True)
    err_loose = float(jnp.max(jnp.abs(out - ref_f32)))

    assert err_tight < 1e-4, f"tight max abs err {err_tight}"
    assert err_loose < 5e-2, f"loose max abs err {err_loose}"
    print("KERNEL_OK")
</pallas_src>

<mosaic_0001>
module attributes {stable_mosaic.version = 11 : i64} {
  func.func @_bn_silu_kernel(%arg0: i32, %arg1: i32, %arg2: memref<32x128xf32, #tpu.memory_space<vmem>>, %arg3: memref<1x128xf32, #tpu.memory_space<vmem>>, %arg4: memref<1x128xf32, #tpu.memory_space<vmem>>, %arg5: memref<32x128xf32, #tpu.memory_space<vmem>>) attributes {dimension_semantics = [#tpu.dimension_semantics<parallel>, #tpu.dimension_semantics<parallel>], iteration_bounds = array<i64: 1, 1>, scalar_prefetch = 0 : i64, scratch_operands = 0 : i64, tpu.core_type = #tpu.core_type<tc>, window_params = [{transform_indices = @transform_0, window_bounds = array<i64: 32, 128>}, {transform_indices = @transform_1, window_bounds = array<i64: 1, 128>}, {transform_indices = @transform_2, window_bounds = array<i64: 1, 128>}, {transform_indices = @transform_3, window_bounds = array<i64: 32, 128>}]} {
    %c0 = arith.constant 0 : index
    %c0_0 = arith.constant 0 : index
    %0 = vector.load %arg2[%c0, %c0_0] : memref<32x128xf32, #tpu.memory_space<vmem>>, vector<32x128xf32>
    %c0_1 = arith.constant 0 : index
    %c0_2 = arith.constant 0 : index
    %1 = vector.load %arg3[%c0_1, %c0_2] : memref<1x128xf32, #tpu.memory_space<vmem>>, vector<1x128xf32>
    %2 = vector.broadcast %1 : vector<1x128xf32> to vector<32x128xf32>
    %3 = arith.mulf %0, %2 : vector<32x128xf32>
    %c0_3 = arith.constant 0 : index
    %c0_4 = arith.constant 0 : index
    %4 = vector.load %arg4[%c0_3, %c0_4] : memref<1x128xf32, #tpu.memory_space<vmem>>, vector<1x128xf32>
    %5 = vector.broadcast %4 : vector<1x128xf32> to vector<32x128xf32>
    %6 = arith.addf %3, %5 : vector<32x128xf32>
    %7 = arith.negf %6 : vector<32x128xf32>
    %8 = math.exp %7 : vector<32x128xf32>
    %cst = arith.constant 1.000000e+00 : f32
    %9 = vector.broadcast %cst : f32 to vector<32x128xf32>
    %10 = arith.addf %9, %8 : vector<32x128xf32>
    %11 = arith.divf %9, %10 : vector<32x128xf32>
    %12 = arith.mulf %6, %11 : vector<32x128xf32>
    %c0_5 = arith.constant 0 : index
    %c0_6 = arith.constant 0 : index
    %13 = vector.load %arg5[%c0_5, %c0_6] : memref<32x128xf32, #tpu.memory_space<vmem>>, vector<32x128xf32>
    tpu.vector_store %arg5[%c0_5, %c0_6], %12 {strides = array<i32>} : memref<32x128xf32, #tpu.memory_space<vmem>>, vector<32x128xf32>,
    return
  }
  func.func @transform_0(%arg0: i32, %arg1: i32) -> (i32, i32) {
    %c0_i32 = arith.constant 0 : i32
    return %arg0, %arg1 : i32, i32
  }
  func.func @transform_1(%arg0: i32, %arg1: i32) -> (i32, i32) {
    %c0_i32 = arith.constant 0 : i32
    %c0_i32_0 = arith.constant 0 : i32
    return %c0_i32, %arg1 : i32, i32
  }
  func.func @transform_2(%arg0: i32, %arg1: i32) -> (i32, i32) {
    %c0_i32 = arith.constant 0 : i32
    %c0_i32_0 = arith.constant 0 : i32
    return %c0_i32, %arg1 : i32, i32
  }
  func.func @transform_3(%arg0: i32, %arg1: i32) -> (i32, i32) {
    %c0_i32 = arith.constant 0 : i32
    return %arg0, %arg1 : i32, i32
  }
}

module attributes {stable_mosaic.version = 11 : i64} {
  func.func @_linear_stats_kernel(%arg0: i32, %arg1: i32, %arg2: i32, %arg3: memref<32x128xbf16, #tpu.memory_space<vmem>>, %arg4: memref<128x128xbf16, #tpu.memory_space<vmem>>, %arg5: memref<32x128xf32, #tpu.memory_space<vmem>>, %arg6: memref<8x128xf32, #tpu.memory_space<vmem>>, %arg7: memref<32x128xf32, #tpu.memory_space<vmem>>) attributes {dimension_semantics = [#tpu.dimension_semantics<parallel>, #tpu.dimension_semantics<parallel>, #tpu.dimension_semantics<arbitrary>], iteration_bounds = array<i64: 1, 1, 1>, scalar_prefetch = 0 : i64, scratch_operands = 1 : i64, tpu.core_type = #tpu.core_type<tc>, window_params = [{transform_indices = @transform_0, window_bounds = array<i64: 32, 128>}, {transform_indices = @transform_1, window_bounds = array<i64: 128, 128>}, {transform_indices = @transform_2, window_bounds = array<i64: 32, 128>}, {transform_indices = @transform_3, window_bounds = array<i64: 8, 128>}]} {
    %c0_i32 = arith.constant 0 : i32
    %0 = arith.cmpi eq, %arg2, %c0_i32 : i32
    %1 = arith.extui %0 : i1 to i32
    %c0_i32_0 = arith.constant 0 : i32
    %2 = arith.cmpi ne, %1, %c0_i32_0 : i32
    scf.if %2 {
      %cst_10 = arith.constant 0.000000e+00 : f32
      %12 = vector.broadcast %cst_10 : f32 to vector<32x128xf32>
      %c0_11 = arith.constant 0 : index
      %c0_12 = arith.constant 0 : index
      %13 = vector.load %arg7[%c0_11, %c0_12] : memref<32x128xf32, #tpu.memory_space<vmem>>, vector<32x128xf32>
      tpu.vector_store %arg7[%c0_11, %c0_12], %12 {strides = array<i32>} : memref<32x128xf32, #tpu.memory_space<vmem>>, vector<32x128xf32>,
    } else {
    }
    %c0 = arith.constant 0 : index
    %c0_1 = arith.constant 0 : index
    %3 = vector.load %arg7[%c0, %c0_1] : memref<32x128xf32, #tpu.memory_space<vmem>>, vector<32x128xf32>
    %c0_2 = arith.constant 0 : index
    %c0_3 = arith.constant 0 : index
    %4 = vector.load %arg3[%c0_2, %c0_3] : memref<32x128xbf16, #tpu.memory_space<vmem>>, vector<32x128xbf16>
    %c0_4 = arith.constant 0 : index
    %c0_5 = arith.constant 0 : index
    %5 = vector.load %arg4[%c0_4, %c0_5] : memref<128x128xbf16, #tpu.memory_space<vmem>>, vector<128x128xbf16>
    %cst = arith.constant dense<0.000000e+00> : vector<32x128xf32>
    %6 = tpu.matmul %4, %5, %cst {dimension_numbers = #tpu.dot_dimension_numbers<[1], [0], [0], [1], [0, 0, 1, 1], [], []>} : vector<32x128xbf16>, vector<128x128xbf16>, vector<32x128xf32> -> vector<32x128xf32>
    %7 = arith.addf %3, %6 : vector<32x128xf32>
    %c0_6 = arith.constant 0 : index
    %c0_7 = arith.constant 0 : index
    %8 = vector.load %arg7[%c0_6, %c0_7] : memref<32x128xf32, #tpu.memory_space<vmem>>, vector<32x128xf32>
    tpu.vector_store %arg7[%c0_6, %c0_7], %7 {strides = array<i32>} : memref<32x128xf32, #tpu.memory_space<vmem>>, vector<32x128xf32>,
    %c0_i32_8 = arith.constant 0 : i32
    %9 = arith.cmpi eq, %arg2, %c0_i32_8 : i32
    %10 = arith.extui %9 : i1 to i32
    %c0_i32_9 = arith.constant 0 : i32
    %11 = arith.cmpi ne, %10, %c0_i32_9 : i32
    scf.if %11 {
      %c0_10 = arith.constant 0 : index
      %c0_11 = arith.constant 0 : index
      %12 = vector.load %arg7[%c0_10, %c0_11] : memref<32x128xf32, #tpu.memory_space<vmem>>, vector<32x128xf32>
      %c0_12 = arith.constant 0 : index
      %c0_13 = arith.constant 0 : index
      %13 = vector.load %arg5[%c0_12, %c0_13] : memref<32x128xf32, #tpu.memory_space<vmem>>, vector<32x128xf32>
      tpu.vector_store %arg5[%c0_12, %c0_13], %12 {strides = array<i32>} : memref<32x128xf32, #tpu.memory_space<vmem>>, vector<32x128xf32>,
      %cst_14 = arith.constant dense<0.000000e+00> : vector<128xf32>
      %14 = vector.multi_reduction <add>, %12, %cst_14 [0] : vector<32x128xf32> to vector<128xf32>
      %15 = vector.shape_cast %14 : vector<128xf32> to vector<1x128xf32>
      %16 = arith.mulf %12, %12 : vector<32x128xf32>
      %cst_15 = arith.constant dense<0.000000e+00> : vector<128xf32>
      %17 = vector.multi_reduction <add>, %16, %cst_15 [0] : vector<32x128xf32> to vector<128xf32>
      %18 = vector.shape_cast %17 : vector<128xf32> to vector<1x128xf32>
      %cst_16 = arith.constant 0.000000e+00 : f32
      %19 = vector.broadcast %cst_16 : f32 to vector<6x128xf32>
      %20 = tpu.concatenate %15, %18, %19 in 0 : vector<1x128xf32>, vector<1x128xf32>, vector<6x128xf32> -> vector<8x128xf32>
      %c0_17 = arith.constant 0 : index
      %c0_18 = arith.constant 0 : index
      %21 = vector.load %arg6[%c0_17, %c0_18] : memref<8x128xf32, #tpu.memory_space<vmem>>, vector<8x128xf32>
      tpu.vector_store %arg6[%c0_17, %c0_18], %20 {strides = array<i32>} : memref<8x128xf32, #tpu.memory_space<vmem>>, vector<8x128xf32>,
    } else {
    }
    return
  }
  func.func @transform_0(%arg0: i32, %arg1: i32, %arg2: i32) -> (i32, i32) {
    %c0_i32 = arith.constant 0 : i32
    return %arg0, %arg2 : i32, i32
  }
  func.func @transform_1(%arg0: i32, %arg1: i32, %arg2: i32) -> (i32, i32) {
    %c0_i32 = arith.constant 0 : i32
    return %arg2, %arg1 : i32, i32
  }
  func.func @transform_2(%arg0: i32, %arg1: i32, %arg2: i32) -> (i32, i32) {
    %c0_i32 = arith.constant 0 : i32
    return %arg0, %arg1 : i32, i32
  }
  func.func @transform_3(%arg0: i32, %arg1: i32, %arg2: i32) -> (i32, i32) {
    %c0_i32 = arith.constant 0 : i32
    return %arg0, %arg1 : i32, i32
  }
}

</mosaic_0001>

<bundles_post_ra>
// kernel: mlp_layer.3
= control target key start
LH: loop header
LB: loop body
LE: loop exit
PB: predicated region body
PF: predicated region fallthrough
CT: control target
= control target key end

     0   :  { %s191_s0 = inlined_call_operand.vmem [shape: f32[32,128], index: 0, kind: input, shape index: {}]   ;;  %s192_s1 = inlined_call_operand.vmem [shape: f32[1,128], index: 1, kind: input, shape index: {}]   ;;  %s193_s2 = inlined_call_operand.vmem [shape: f32[1,128], index: 2, kind: input, shape index: {}]   ;;  %s194_s3 = inlined_call_operand.hbm [shape: f32[32,128], index: 3, kind: output, shape index: {}]  }
   0x1   :  { %v15_v0 = vld [vmem:[%s191_s0] sm:$0xff]  ;;  %v16_v4 = vld [vmem:[%s191_s0 + $0x8] sm:$0xff]  ;;  %v17_v5 = vld [vmem:[%s191_s0 + $0x10] sm:$0xff] }
   0x2   :  { %v89_v1 = vld [vmem:[%s192_s1] ss:$0 sm:$0xff]  ;;  %v18_v6 = vld [vmem:[%s191_s0 + $0x18] sm:$0xff] }
   0x3   :  { %v90_v2 = vld [vmem:[%s193_s2] ss:$0 sm:$0xff]  ;;  %v26_v3 = vmul.f32 %v89_v1, %v15_v0  ;;  %v27_v7 = vmul.f32 %v89_v1, %v16_v4  ;;  %v28_v8 = vmul.f32 %v89_v1, %v17_v5  ;;  %v29_v9 = vmul.f32 %v89_v1, %v18_v6 }
   0x4   :  { %8 = vsyncpa [#allocation3], 0  ;;  %s138_s0 = smov [#allocation2]  }
   0x5   :  { %v37_v10 = vadd.f32 %v90_v2, %v26_v3  ;;  %v38_v11 = vadd.f32 %v90_v2, %v27_v7  ;;  %v39_v12 = vadd.f32 %v90_v2, %v28_v8  ;;  %v40_v13 = vadd.f32 %v90_v2, %v29_v9  ;;  %s78_s1 = sshll.u32 %s138_s0, 4  ;;  %s79_s1 = int_to_ptr.vmem [resolvable:$true] %s78_s1 }
   0x6   :  { %s114_s2 = scalar_lea.vmem %s79_s1, 512  ;;  %p119_p1 = scmp.lt.s32.totalorder %s79_s1, %s79_s1 }
   0x7   :  { %v91_v14 = vmul.f32 -1.442695, %v37_v10  ;;  %v92_v15 = vmul.f32 -1.442695, %v38_v11  ;;  %v93_v16 = vmul.f32 -1.442695, %v39_v12  ;;  %p115_p0 = scmp.ne.s32.totalorder %s79_s1, %s114_s2  ;;  %p120_p2 = scmp.lt.s32.totalorder %s114_s2, %s114_s2 }
   0x8   :  { %v94_v17 = vmul.f32 -1.442695, %v40_v13 }
   0x9   :  { %98 = vpow2.f32 %v91_v14  ;;  %p121_p3 = por %p120_p2, %p119_p1 }
   0xa   :  { %100 = vpow2.f32 %v92_v15 }
   0xb   :  { %102 = vpow2.f32 %v93_v16  ;;  %p122_p4 = pnand %p121_p3, %p115_p0 }
   0xc   :  { %104 = vpow2.f32 %v94_v17 }
  0x13   :  { %v99_v18 = vpop.eup %98 }
  0x14   :  { %v101_v19 = vpop.eup %100  ;;  %v53_v20 = vadd.f32 1.0, %v99_v18 }
  0x15   :  { %v103_v21 = vpop.eup %102  ;;  %v54_v22 = vadd.f32 1.0, %v101_v19 }
  0x16   :  { %v105_v23 = vpop.eup %104  ;;  %106 = vrcp.f32 %v53_v20  ;;  %v55_v24 = vadd.f32 1.0, %v103_v21 }
  0x17   :  { %108 = vrcp.f32 %v54_v22  ;;  %v56_v25 = vadd.f32 1.0, %v105_v23 }
  0x18   :  { %110 = vrcp.f32 %v55_v24 }
  0x19   :  { %112 = vrcp.f32 %v56_v25 }
  0x20   :  { %v107_v26 = vpop.eup %106 }
  0x21   :  { %v109_v27 = vpop.eup %108  ;;  %v65_v28 = vmul.f32 %v107_v26, %v37_v10 }
  0x22   :  { %v111_v29 = vpop.eup %110  ;;  %v66_v30 = vmul.f32 %v109_v27, %v38_v11 }
  0x23   :  { %v113_v31 = vpop.eup %112  ;;  %69 = vst [vmem:[#allocation2] sm:$0xff] %v65_v28  ;;  %v67_v32 = vmul.f32 %v111_v29, %v39_v12 }
  0x24   :  { %70 = vst [vmem:[#allocation2 + $0x8] sm:$0xff] %v66_v30  ;;  %v68_v33 = vmul.f32 %v113_v31, %v40_v13 }
  0x25   :  { %71 = vst [vmem:[#allocation2 + $0x10] sm:$0xff] %v67_v32 }
  0x26   :  { %72 = vst [vmem:[#allocation2 + $0x18] sm:$0xff] %v68_v33 }
  0x27   :  { %125 = shalt.err (!%p122_p4)
}
  0x28   :  { %s126_s26 = scalar_lea.hbm %s194_s3, 512 }
  0x29   :  { %p127_p5 = scmp.ne.s32.totalorder %s194_s3, %s126_s26  ;;  %p130_p6 = scmp.lt.u32.totalorder %s126_s26, %s194_s3 }
  0x2b   :  { %p132_p7 = pnand %p130_p6, %p127_p5 }
  0x2d   :  { %135 = shalt.err (!%p132_p7)
}
  0x2e   :  { %s139_s4 = smov 128   ;;  %s140_s5 = smov 8  }
  0x2f   :  { %84 = dma.vmem_to_hbm [thread:$0]  %s79_s1, 512, %s194_s3, [#allocation3], %s139_s4, %s139_s4, %s140_s5  }
  0x30   :  { %136 = dma.done.wait [#allocation3], 512  }
  0x31   :  { %137 = vsyncadd [#allocation3], 4294966784 }
  0x32   :  { %88 = vsyncpa [#allocation3], 1 }

// kernel: mlp_layer.2
= control target key start
LH: loop header
LB: loop body
LE: loop exit
PB: predicated region body
PF: predicated region fallthrough
CT: control target
= control target key end

     0   :  { %vm196_vm0 = vcmask 1040384   ;;  %vm198_vm1 = vcmask 1041408   ;;  %s324_s1 = inlined_call_operand.vmem [shape: bf16[128,128], index: 1, kind: input, shape index: {}]   ;;  %s325_s0 = inlined_call_operand.vmem [shape: bf16[32,128], index: 0, kind: input, shape index: {}]   ;;  %s326_s2 = inlined_call_operand.vmem [shape: f32[32,128], index: 2, kind: output, shape index: {0}]   ;;  %s327_s3 = inlined_call_operand.vmem [shape: f32[8,128], index: 3, kind: output, shape index: {1}]  }
   0x1   :  { %v249_v0 = vld [vmem:[%s324_s1] sm:$0xff]   ;;  %v250_v1 = vld [vmem:[%s324_s1 + $0x8] sm:$0xff]   ;;  %v251_v2 = vld [vmem:[%s324_s1 + $0x10] sm:$0xff]  }
   0x2   :  { %229 = vmatprep.subr.bf16.mxu0 %v249_v0  ;;  %v252_v3 = vld [vmem:[%s324_s1 + $0x18] sm:$0xff]   ;;  %v257_v4 = vld [vmem:[%s325_s0] sm:$0xff]   ;;  %v254_v6 = vld [vmem:[%s324_s1 + $0x28] sm:$0xff]  }
   0x3   :  { %230 = vmatpush3.bf16.msra.mxu0 %v249_v0  ;;  %245 = vmatprep.mubr.bf16.mxu0 %v257_v4  ;;  %v253_v5 = vld [vmem:[%s324_s1 + $0x20] sm:$0xff]   ;;  %v255_v7 = vld [vmem:[%s324_s1 + $0x30] sm:$0xff]   ;;  %v256_v8 = vld [vmem:[%s324_s1 + $0x38] sm:$0xff]  }
   0x4   :  { %231 = vmatprep.subr.bf16.mxu0 %v250_v1  ;;  %v258_v9 = vld [vmem:[%s325_s0 + $0x8] sm:$0xff]  }
   0x7   :  { %232 = vmatpush3.bf16.msra.mxu0 %v250_v1 }
   0x8   :  { %233 = vmatprep.subr.bf16.mxu0 %v251_v2 }
   0xb   :  { %234 = vmatpush3.bf16.msra.mxu0 %v251_v2 }
   0xc   :  { %235 = vmatprep.subr.bf16.mxu0 %v252_v3 }
   0xf   :  { %236 = vmatpush3.bf16.msra.mxu0 %v252_v3 }
  0x10   :  { %237 = vmatprep.subr.bf16.mxu0 %v253_v5 }
  0x13   :  { %238 = vmatpush3.bf16.msra.mxu0 %v253_v5 }
  0x14   :  { %239 = vmatprep.subr.bf16.mxu0 %v254_v6 }
  0x17   :  { %240 = vmatpush3.bf16.msra.mxu0 %v254_v6 }
  0x18   :  { %241 = vmatprep.subr.bf16.mxu0 %v255_v7 }
  0x1b   :  { %242 = vmatpush3.bf16.msra.mxu0 %v255_v7 }
  0x1c   :  { %243 = vmatprep.subr.bf16.mxu0 %v256_v8 }
  0x1f   :  { %244 = vmatpush3.bf16.msra.mxu0 %v256_v8 }
  0x22   :  { %246 = vmatmul.mubr.bf16.vlgmr.msra.gmra.mrb[0].mxu0 %v258_v9 }
  0xf5   :  { %v247_v10 = vpop.f32.mrb[0].mxu0 }
  0xf6   :  { %172 = vst [vmem:[%s326_s2 + $0x10] sm:$0xff] %v247_v10  ;;  %v140_v11 = vpop.f32.mrb[1].mxu0  ;;  %v185_v17 = vmul.f32 %v247_v10, %v247_v10 }
  0xf7   :  { %170 = vst [vmem:[%s326_s2] sm:$0xff] %v140_v11  ;;  %v248_v12 = vpop.f32.mrb[2].mxu0  ;;  %v183_v14 = vmul.f32 %v140_v11, %v140_v11 }
  0xf8   :  { %173 = vst [vmem:[%s326_s2 + $0x18] sm:$0xff] %v248_v12  ;;  %v143_v13 = vpop.f32.mrb[3].mxu0  ;;  %v186_v20 = vmul.f32 %v248_v12, %v248_v12 }
  0xf9   :  { %171 = vst [vmem:[%s326_s2 + $0x8] sm:$0xff] %v143_v13  ;;  %v174_v15 = vadd.f32 %v143_v13, %v140_v11  ;;  %v184_v16 = vmul.f32 %v143_v13, %v143_v13 }
  0xfb   :  { %v175_v18 = vadd.f32 %v247_v10, %v174_v15  ;;  %v187_v19 = vadd.f32 %v184_v16, %v183_v14 }
  0xfd   :  { %v176_v21 = vadd.f32 %v248_v12, %v175_v18  ;;  %v188_v22 = vadd.f32 %v187_v19, %v185_v17 }
  0xff   :  { %v177_v23 = vrot.slane %v176_v21, 4  ;;  %v189_v24 = vadd.f32 %v188_v22, %v186_v20 }
 0x101   :  { %v178_v25 = vadd.f32 %v177_v23, %v176_v21  ;;  %v190_v26 = vrot.slane %v189_v24, 4 }
 0x103   :  { %v179_v27 = vrot.slane %v178_v25, 2  ;;  %v191_v28 = vadd.f32 %v190_v26, %v189_v24 }
 0x105   :  { %v180_v29 = vadd.f32 %v179_v27, %v178_v25  ;;  %v192_v30 = vrot.slane %v191_v28, 2 }
 0x107   :  { %v181_v31 = vrot.slane %v180_v29, 1  ;;  %v193_v32 = vadd.f32 %v192_v30, %v191_v28 }
 0x109   :  { %v194_v33 = vrot.slane %v193_v32, 1  ;;  %v182_v34 = vadd.f32 %v181_v31, %v180_v29 }
 0x10b   :  { %v195_v35 = vadd.f32 %v194_v33, %v193_v32 }
 0x10d   :  { %v197_v36 = vsel %vm196_vm0, %v182_v34, %v195_v35 }
 0x10e   :  { %v199_v37 = vsel %vm198_vm1, %v197_v36, 0.0 }
 0x10f   :  { %200 = vst [vmem:[%s327_s3] sm:$0xff] %v199_v37 }

</bundles_post_ra>
